<compile_context>
chip_gen: v7x
topology: tpu7x:2x2x1
jax: 0.10.0
libtpu: 0.0.40
codegen_flags: <defaults>
</compile_context>

<pallas_src>
import functools

import jax
import jax.numpy as jnp
from jax import lax
from jax.experimental import pallas as pl
from jax.experimental.pallas import tpu as pltpu


def _round_up(n, m):
    return ((n + m - 1) // m) * m


def _plain_jax_loss(output, target):
    d = output.astype(jnp.float32) - target.astype(jnp.float32)
    return jnp.mean(d[..., 0] ** 2 + d[..., 1] ** 2)


def _tensorcores_per_chip():
    try:
        kind = jax.devices()[0].device_kind.lower()
    except Exception:
        return 1
    return 2 if ("v7" in kind or "7x" in kind) else 1


def _sum_sq_diff_kernel(x_ref, y_ref, o_ref, *, rows_valid, n_steps,
                        needs_mask, has_parallel_axis):
    """Accumulate squared differences of one (tr, cols) row-block.

    The output block is VMEM-resident across the reduction axis and acts as
    the accumulator directly (no scratch, no epilogue copy).
    """
    if has_parallel_axis:
        chunk = pl.program_id(0)
        step = pl.program_id(1)
    else:
        chunk = 0
        step = pl.program_id(0)

    @pl.when(step == 0)
    def _():
        o_ref[...] = jnp.zeros(o_ref.shape, jnp.float32)

    d = x_ref[...].astype(jnp.float32) - y_ref[...].astype(jnp.float32)
    sq = d * d
    tr, cols = sq.shape

    if needs_mask:
        # Nominal first row of this block; rows >= rows_valid are padding (or
        # clamped duplicate blocks) and must contribute zero.
        row0 = (chunk * n_steps + step) * tr
        rid = row0 + lax.broadcasted_iota(jnp.int32, (tr, 1), 0)
        sq = jnp.where(rid < rows_valid, sq, 0.0)

    # Fold 8-row groups into the resident (8, cols) accumulator: the reshape
    # only splits whole sublane groups (tr % 8 == 0) so it is a free vreg
    # re-view, and the sum lowers to elementwise VPU adds hidden under DMA.
    # TODO(synk): if a v7x bundle dump ever shows this reshape materializing a
    # VMEM temporary, replace with an unrolled fori_loop over 8-row slabs.
    o_ref[...] += jnp.sum(sq.reshape(-1, 8, cols), axis=0).reshape(o_ref.shape)


def complex_mse_loss(output, target, *, block_bytes=4 * 1024 * 1024,
                     num_parallel=None, min_pallas_elems=65536):
    """Pallas implementation of ComplexMSELoss.forward(output, target)."""
    assert output.shape == target.shape, "output/target shapes must match"
    assert output.ndim >= 2 and output.shape[-1] == 2, "last dim must be (real, imag)"

    shape = output.shape
    denom = 1
    for s in shape[:-1]:
        denom *= s                      # mean over batch * csi_matrix (NOT the trailing 2)
    total = denom * shape[-1]

    # Small-input fast path: fixed launch + plumbing cost dominates.
    if total < min_pallas_elems:
        return _plain_jax_loss(output, target)

    # ---- slab layout: copy-free reshapes only (no pad, no slice) -----------
    cols = None
    for c in (512, 256, 128):
        if total % c == 0:
            cols = c
            break
    if cols is not None:
        rows = total // cols
    else:
        rows = shape[0]
        cols = total // rows            # = csi_matrix * 2, full row width

    itemsize = jnp.dtype(output.dtype).itemsize
    pack = max(8, 32 // itemsize)       # sublane packing: 8 f32 / 16 bf16 / 32 int8

    tr = max(pack, (block_bytes // (cols * itemsize)) // pack * pack)
    tr = min(tr, _round_up(rows, pack))
    if tr * cols * itemsize > (16 << 20):
        # A single minimal row-block would blow the VMEM budget (pathologically
        # wide rows with a row count not divisible by 128). Stay correct.
        # TODO(synk): add column tiling for this edge case instead of fallback.
        return _plain_jax_loss(output, target)

    x = output.reshape(rows, cols)      # pure bitcast-reshape, no HBM copy
    y = target.reshape(rows, cols)

    n_blocks = pl.cdiv(rows, tr)
    cores = _tensorcores_per_chip()
    if num_parallel is None:
        num_parallel = cores if (cores > 1 and n_blocks >= 8) else 1
    num_parallel = max(1, min(int(num_parallel), n_blocks))
    n_steps = pl.cdiv(n_blocks, num_parallel)
    needs_mask = (num_parallel * n_steps * tr) != rows

    kernel = functools.partial(
        _sum_sq_diff_kernel, rows_valid=rows, n_steps=n_steps,
        needs_mask=needs_mask, has_parallel_axis=(num_parallel > 1))

    if num_parallel > 1:
        last_block = n_blocks - 1

        def in_map(c, j):
            # Clamp the (rare) trailing virtual block in-bounds; its nominal
            # rows are >= rows_valid so the in-kernel mask zeroes it out.
            return (jnp.minimum(c * n_steps + j, last_block), 0)

        grid = (num_parallel, n_steps)
        out_shape = jax.ShapeDtypeStruct((num_parallel, 8, cols), jnp.float32)
        out_spec = pl.BlockSpec((1, 8, cols), lambda c, j: (c, 0, 0))
        lead = pltpu.CORE_PARALLEL if num_parallel == cores and cores > 1 else pltpu.PARALLEL
        dim_sem = (lead, pltpu.ARBITRARY)
    else:
        def in_map(j):
            return (j, 0)

        grid = (n_steps,)
        out_shape = jax.ShapeDtypeStruct((8, cols), jnp.float32)
        out_spec = pl.BlockSpec((8, cols), lambda j: (0, 0))
        dim_sem = (pltpu.ARBITRARY,)

    # VMEM budget derived from the actual buffer math (2 inputs x 2 buffers
    # of the native-dtype block + double-buffered output) plus headroom.
    block_in_bytes = tr * cols * itemsize
    out_bytes = num_parallel * 8 * cols * 4
    vmem_limit = 2 * 2 * block_in_bytes + 2 * out_bytes + (4 << 20)
    vmem_limit = int(max(16 << 20, min(vmem_limit, 100 << 20)))

    partials = pl.pallas_call(
        kernel,
        out_shape=out_shape,
        grid_spec=pltpu.PrefetchScalarGridSpec(
            num_scalar_prefetch=0,
            grid=grid,
            in_specs=[pl.BlockSpec((tr, cols), in_map),
                      pl.BlockSpec((tr, cols), in_map)],
            out_specs=out_spec,
        ),
        compiler_params=pltpu.CompilerParams(
            dimension_semantics=dim_sem,
            vmem_limit_bytes=vmem_limit,
        ),
    )(x, y)

    # Tiny epilogue: cross-lane reduce + mean in plain JAX.
    return jnp.sum(partials) / jnp.float32(denom)


if __name__ == "__main__":
    key = jax.random.PRNGKey(0)

    def ref_loss(o, t):
        d = o.astype(jnp.float32) - t.astype(jnp.float32)
        return jnp.mean(d[..., 0] ** 2 + d[..., 1] ** 2)

    def check(name, got, want, tol):
        got = float(got)
        want = float(want)
        assert abs(got - want) <= tol * max(1.0, abs(want)), (name, got, want)

    cases = [
        # (shape, dtype, kwargs, tolerance)
        ((4, 128, 2), jnp.float32, {}, 1e-5),                                   # tiny -> fast path
        ((8, 9000, 2), jnp.float32, {}, 1e-4),                                  # slab (1125,128), masked tail
        ((8, 9000, 2), jnp.float32, dict(block_bytes=128 * 1024), 1e-4),        # multi-step reduction
        ((8, 9000, 2), jnp.float32, dict(block_bytes=128 * 1024,
                                         num_parallel=2), 1e-4),                # 2 chunks + clamped dup block
        ((10, 3300, 2), jnp.float32, {}, 1e-4),                                 # full-row slab (10, 6600)
        ((16, 8192, 2), jnp.bfloat16, {}, 2e-3),                                # bf16 sublane packing (16)
    ]

    for i, (shape, dtype, kwargs, tol) in enumerate(cases):
        key, k1, k2 = jax.random.split(key, 3)
        out = jax.random.normal(k1, shape, dtype=jnp.float32).astype(dtype)
        tgt = jax.random.normal(k2, shape, dtype=jnp.float32).astype(dtype)

        loss = jax.block_until_ready(complex_mse_loss(out, tgt, **kwargs))
        want = jax.block_until_ready(ref_loss(out, tgt))
        check(f"case{i}", loss, want, tol)

    print("KERNEL_OK")
</pallas_src>

<mosaic_0001>
module attributes {stable_mosaic.version = 11 : i64} {
  func.func @_sum_sq_diff_kernel(%arg0: i32, %arg1: memref<1128x128xf32, #tpu.memory_space<vmem>>, %arg2: memref<1128x128xf32, #tpu.memory_space<vmem>>, %arg3: memref<8x128xf32, #tpu.memory_space<vmem>>) attributes {dimension_semantics = [#tpu.dimension_semantics<arbitrary>], iteration_bounds = array<i64: 1>, scalar_prefetch = 0 : i64, scratch_operands = 0 : i64, tpu.core_type = #tpu.core_type<tc>, window_params = [{transform_indices = @transform_0, window_bounds = array<i64: 1128, 128>}, {transform_indices = @transform_1, window_bounds = array<i64: 1128, 128>}, {pipeline_mode = #tpu.pipeline_mode<synchronous>, transform_indices = @transform_2, window_bounds = array<i64: 8, 128>}]} {
    %c0_i32 = arith.constant 0 : i32
    %0 = arith.cmpi eq, %arg0, %c0_i32 : i32
    %1 = arith.extui %0 : i1 to i32
    %c0_i32_0 = arith.constant 0 : i32
    %2 = arith.cmpi ne, %1, %c0_i32_0 : i32
    scf.if %2 {
      %cst_10 = arith.constant 0.000000e+00 : f32
      %23 = vector.broadcast %cst_10 : f32 to vector<8x128xf32>
      %c0_11 = arith.constant 0 : index
      %c0_12 = arith.constant 0 : index
      %24 = vector.load %arg3[%c0_11, %c0_12] : memref<8x128xf32, #tpu.memory_space<vmem>>, vector<8x128xf32>
      tpu.vector_store %arg3[%c0_11, %c0_12], %23 {strides = array<i32>} : memref<8x128xf32, #tpu.memory_space<vmem>>, vector<8x128xf32>,
    } else {
    }
    %c0 = arith.constant 0 : index
    %c0_1 = arith.constant 0 : index
    %3 = vector.load %arg1[%c0, %c0_1] : memref<1128x128xf32, #tpu.memory_space<vmem>>, vector<1128x128xf32>
    %c0_2 = arith.constant 0 : index
    %c0_3 = arith.constant 0 : index
    %4 = vector.load %arg2[%c0_2, %c0_3] : memref<1128x128xf32, #tpu.memory_space<vmem>>, vector<1128x128xf32>
    %5 = arith.subf %3, %4 : vector<1128x128xf32>
    %6 = arith.mulf %5, %5 : vector<1128x128xf32>
    %c0_i32_4 = arith.constant 0 : i32
    %7 = arith.addi %c0_i32_4, %arg0 : i32
    %c1128_i32 = arith.constant 1128 : i32
    %8 = arith.muli %7, %c1128_i32 : i32
    %9 = tpu.iota {dimensions = array<i32: 0>} : vector<1128x1xi32>
    %10 = vector.broadcast %8 : i32 to vector<1128x1xi32>
    %11 = arith.addi %10, %9 : vector<1128x1xi32>
    %c1125_i32 = arith.constant 1125 : i32
    %12 = vector.broadcast %c1125_i32 : i32 to vector<1128x1xi32>
    %13 = arith.cmpi slt, %11, %12 : vector<1128x1xi32>
    %cst = arith.constant 0.000000e+00 : f32
    %14 = vector.shape_cast %13 : vector<1128x1xi1> to vector<1128x1xi1>
    %15 = vector.broadcast %14 : vector<1128x1xi1> to vector<1128x128xi1>
    %16 = vector.broadcast %cst : f32 to vector<1128x128xf32>
    %17 = arith.select %15, %6, %16 : vector<1128x128xi1>, vector<1128x128xf32>
    %c0_5 = arith.constant 0 : index
    %c0_6 = arith.constant 0 : index
    %18 = vector.load %arg3[%c0_5, %c0_6] : memref<8x128xf32, #tpu.memory_space<vmem>>, vector<8x128xf32>
    %19 = vector.shape_cast %17 : vector<1128x128xf32> to vector<141x8x128xf32>
    %cst_7 = arith.constant dense<0.000000e+00> : vector<8x128xf32>
    %20 = vector.multi_reduction <add>, %19, %cst_7 [0] : vector<141x8x128xf32> to vector<8x128xf32>
    %21 = arith.addf %18, %20 : vector<8x128xf32>
    %c0_8 = arith.constant 0 : index
    %c0_9 = arith.constant 0 : index
    %22 = vector.load %arg3[%c0_8, %c0_9] : memref<8x128xf32, #tpu.memory_space<vmem>>, vector<8x128xf32>
    tpu.vector_store %arg3[%c0_8, %c0_9], %21 {strides = array<i32>} : memref<8x128xf32, #tpu.memory_space<vmem>>, vector<8x128xf32>,
    return
  }
  func.func @transform_0(%arg0: i32) -> (i32, i32) {
    %c0_i32 = arith.constant 0 : i32
    %c0_i32_0 = arith.constant 0 : i32
    return %arg0, %c0_i32 : i32, i32
  }
  func.func @transform_1(%arg0: i32) -> (i32, i32) {
    %c0_i32 = arith.constant 0 : i32
    %c0_i32_0 = arith.constant 0 : i32
    return %arg0, %c0_i32 : i32, i32
  }
  func.func @transform_2(%arg0: i32) -> (i32, i32) {
    %c0_i32 = arith.constant 0 : i32
    %c0_i32_0 = arith.constant 0 : i32
    %c0_i32_1 = arith.constant 0 : i32
    return %c0_i32, %c0_i32_0 : i32, i32
  }
}

</mosaic_0001>

<bundles_post_ra>
// kernel: tpu_custom_call.1
= control target key start
LH: loop header
LB: loop body
LE: loop exit
PB: predicated region body
PF: predicated region fallthrough
CT: control target
= control target key end

     0   :  { %7 = vsyncpa [#allocation3], 0  ;;  %s1751_s0 = inlined_call_operand.hbm [shape: f32[1125,128], index: 0, kind: input, shape index: {}]   ;;  %s1752_s1 = inlined_call_operand.hbm [shape: f32[1125,128], index: 1, kind: input, shape index: {}]   ;;  %s1753_s2 = inlined_call_operand.hbm [shape: f32[8,128], index: 2, kind: output, shape index: {}]  }
   0x1   :  { %8 = vsyncpa [#allocation6], 0 }
   0x2   :  { %9 = vsyncpa [#allocation4], 0  ;;  %s1695_s9 = smov [#allocation2]   ;;  %s1623_s13 = scalar_lea.hbm %s1751_s0, 18048 }
   0x3   :  { %s15_s10 = sshll.u32 %s1695_s9, 4  ;;  %p1624_p0 = scmp.ne.s32.totalorder %s1751_s0, %s1623_s13  ;;  %s16_s10 = int_to_ptr.vmem [resolvable:$true] %s15_s10 }
   0x4   :  { %p1627_p1 = scmp.lt.u32.totalorder %s1623_s13, %s1751_s0 }
   0x6   :  { %p1629_p2 = pnand %p1627_p1, %p1624_p0 }
   0x8   :  { %1632 = shalt.err (!%p1629_p2)
}
   0x9   :  { %s1633_s18 = scalar_lea.vmem %s16_s10, 18048  ;;  %p1638_p4 = scmp.lt.s32.totalorder %s16_s10, %s16_s10 }
   0xa   :  { %p1634_p3 = scmp.ne.s32.totalorder %s16_s10, %s1633_s18  ;;  %p1639_p5 = scmp.lt.s32.totalorder %s1633_s18, %s1633_s18 }
   0xc   :  { %p1640_p6 = por %p1639_p5, %p1638_p4 }
   0xe   :  { %p1641_p7 = pnand %p1640_p6, %p1634_p3 }
  0x10   :  { %1644 = shalt.err (!%p1641_p7)
}
  0x11   :  { %s1696_s19 = smov 128   ;;  %s1697_s20 = smov 8  }
  0x12   :  { %21 = dma.hbm_to_vmem [thread:$0]  %s1751_s0, 18048, %s16_s10, [#allocation3], %s1696_s19, %s1696_s19, %s1697_s20  }
  0x13   :  { %s1698_s23 = smov [#allocation5]   ;;  %s1645_s27 = scalar_lea.hbm %s1752_s1, 18048 }
  0x14   :  { %s27_s24 = sshll.u32 %s1698_s23, 4  ;;  %p1646_p8 = scmp.ne.s32.totalorder %s1752_s1, %s1645_s27  ;;  %s28_s24 = int_to_ptr.vmem [resolvable:$true] %s27_s24 }
  0x15   :  { %p1649_p9 = scmp.lt.u32.totalorder %s1645_s27, %s1752_s1 }
  0x17   :  { %p1651_p10 = pnand %p1649_p9, %p1646_p8 }
  0x19   :  { %1654 = shalt.err (!%p1651_p10)
}
  0x1a   :  { %s1655_s4 = scalar_lea.vmem %s28_s24, 18048  ;;  %p1660_p12 = scmp.lt.s32.totalorder %s28_s24, %s28_s24 }
  0x1b   :  { %p1656_p11 = scmp.ne.s32.totalorder %s28_s24, %s1655_s4  ;;  %p1661_p13 = scmp.lt.s32.totalorder %s1655_s4, %s1655_s4 }
  0x1d   :  { %p1662_p0 = por %p1661_p13, %p1660_p12 }
  0x1f   :  { %p1663_p1 = pnand %p1662_p0, %p1656_p11 }
  0x21   :  { %1666 = shalt.err (!%p1663_p1)
}
  0x22   :  { %33 = dma.hbm_to_vmem [thread:$0]  %s1752_s1, 18048, %s28_s24, [#allocation6], %s1696_s19, %s1696_s19, %s1697_s20  }
  0x23   :  { %1689 = dma.done.wait [#allocation3], 18048  }
  0x24   :  { %1690 = vsyncadd [#allocation3], 4294949248 }
  0x25   :  { %1691 = dma.done.wait [#allocation6], 18048  }
  0x26   :  { %1692 = vsyncadd [#allocation6], 4294949248  ;;  %v45_v0 = vld [vmem:[#allocation2] sm:$0xff]  ;;  %v46_v1 = vld [vmem:[#allocation2 + $0x8] sm:$0xff]  ;;  %s1699_s1 = smov [#allocation7]  }
  0x27   :  { %v186_v2 = vld [vmem:[#allocation5] sm:$0xff]  ;;  %v187_v3 = vld [vmem:[#allocation5 + $0x8] sm:$0xff]  ;;  %v188_v5 = vld [vmem:[#allocation5 + $0x10] sm:$0xff]  ;;  %s1607_s6 = sshll.u32 %s1699_s1, 4  ;;  %s1608_s6 = int_to_ptr.vmem [resolvable:$true] %s1607_s6 }
  0x28   :  { %v47_v4 = vld [vmem:[#allocation2 + $0x10] sm:$0xff]  ;;  %v327_v6 = vsub.f32 %v45_v0, %v186_v2  ;;  %v328_v7 = vsub.f32 %v46_v1, %v187_v3  ;;  %v48_v8 = vld [vmem:[#allocation2 + $0x18] sm:$0xff]  ;;  %v189_v9 = vld [vmem:[#allocation5 + $0x18] sm:$0xff]  ;;  %s1667_s7 = scalar_lea.vmem %s1608_s6, 128  ;;  %p1672_p3 = scmp.lt.s32.totalorder %s1608_s6, %s1608_s6 }
  0x29   :  { %v329_v10 = vsub.f32 %v47_v4, %v188_v5  ;;  %v49_v11 = vld [vmem:[#allocation2 + $0x20] sm:$0xff]  ;;  %v190_v12 = vld [vmem:[#allocation5 + $0x20] sm:$0xff]  ;;  %v330_v13 = vsub.f32 %v48_v8, %v189_v9  ;;  %v191_v17 = vld [vmem:[#allocation5 + $0x28] sm:$0xff]  ;;  %p1668_p2 = scmp.ne.s32.totalorder %s1608_s6, %s1667_s7  ;;  %p1673_p4 = scmp.lt.s32.totalorder %s1667_s7, %s1667_s7 }
  0x2a   :  { %v468_v14 = vmul.f32 %v327_v6, %v327_v6  ;;  %v469_v15 = vmul.f32 %v328_v7, %v328_v7  ;;  %v50_v16 = vld [vmem:[#allocation2 + $0x28] sm:$0xff]  ;;  %v331_v18 = vsub.f32 %v49_v11, %v190_v12  ;;  %v51_v20 = vld [vmem:[#allocation2 + $0x30] sm:$0xff]  ;;  %v192_v21 = vld [vmem:[#allocation5 + $0x30] sm:$0xff] }
  0x2b   :  { %v470_v19 = vmul.f32 %v329_v10, %v329_v10  ;;  %v332_v22 = vsub.f32 %v50_v16, %v191_v17  ;;  %v471_v23 = vmul.f32 %v330_v13, %v330_v13  ;;  %v52_v25 = vld [vmem:[#allocation2 + $0x38] sm:$0xff]  ;;  %v193_v26 = vld [vmem:[#allocation5 + $0x38] sm:$0xff]  ;;  %v333_v27 = vsub.f32 %v51_v20, %v192_v21  ;;  %v194_v31 = vld [vmem:[#allocation5 + $0x40] sm:$0xff]  ;;  %p1674_p5 = por %p1673_p4, %p1672_p3 }
  0x2c   :  { %v1459_v24 = vadd.f32 %v469_v15, %v468_v14  ;;  %v472_v28 = vmul.f32 %v331_v18, %v331_v18  ;;  %v53_v30 = vld [vmem:[#allocation2 + $0x40] sm:$0xff]  ;;  %v334_v32 = vsub.f32 %v52_v25, %v193_v26  ;;  %v54_v35 = vld [vmem:[#allocation2 + $0x48] sm:$0xff]  ;;  %v195_v36 = vld [vmem:[#allocation5 + $0x48] sm:$0xff] }
  0x2d   :  { %v473_v33 = vmul.f32 %v332_v22, %v332_v22  ;;  %v335_v37 = vsub.f32 %v53_v30, %v194_v31  ;;  %v474_v38 = vmul.f32 %v333_v27, %v333_v27  ;;  %v55_v40 = vld [vmem:[#allocation2 + $0x50] sm:$0xff]  ;;  %v196_v41 = vld [vmem:[#allocation5 + $0x50] sm:$0xff]  ;;  %v336_v42 = vsub.f32 %v54_v35, %v195_v36  ;;  %v197_v46 = vld [vmem:[#allocation5 + $0x58] sm:$0xff]  ;;  %p1675_p6 = pnand %p1674_p5, %p1668_p2 }
  0x2e   :  { %v1460_v29 = vadd.f32 %v1459_v24, %v470_v19  ;;  %v475_v43 = vmul.f32 %v334_v32, %v334_v32  ;;  %v56_v45 = vld [vmem:[#allocation2 + $0x58] sm:$0xff]  ;;  %v337_v47 = vsub.f32 %v55_v40, %v196_v41  ;;  %v57_v50 = vld [vmem:[#allocation2 + $0x60] sm:$0xff]  ;;  %v198_v51 = vld [vmem:[#allocation5 + $0x60] sm:$0xff] }
  0x2f   :  { %v476_v48 = vmul.f32 %v335_v37, %v335_v37  ;;  %v338_v52 = vsub.f32 %v56_v45, %v197_v46  ;;  %v477_v53 = vmul.f32 %v336_v42, %v336_v42  ;;  %v58_v55 = vld [vmem:[#allocation2 + $0x68] sm:$0xff]  ;;  %v199_v56 = vld [vmem:[#allocation5 + $0x68] sm:$0xff]  ;;  %v339_v57 = vsub.f32 %v57_v50, %v198_v51  ;;  %v200_v61 = vld [vmem:[#allocation5 + $0x70] sm:$0xff] }
  0x30   :  { %v1461_v34 = vadd.f32 %v1460_v29, %v471_v23  ;;  %v478_v58 = vmul.f32 %v337_v47, %v337_v47  ;;  %v59_v60 = vld [vmem:[#allocation2 + $0x70] sm:$0xff]  ;;  %v340_v62 = vsub.f32 %v58_v55, %v199_v56  ;;  %v60_v1 = vld [vmem:[#allocation2 + $0x78] sm:$0xff]  ;;  %v201_v2 = vld [vmem:[#allocation5 + $0x78] sm:$0xff] }
  0x31   :  { %v479_v63 = vmul.f32 %v338_v52, %v338_v52  ;;  %v341_v3 = vsub.f32 %v59_v60, %v200_v61  ;;  %v480_v4 = vmul.f32 %v339_v57, %v339_v57  ;;  %v61_v6 = vld [vmem:[#allocation2 + $0x80] sm:$0xff]  ;;  %v202_v7 = vld [vmem:[#allocation5 + $0x80] sm:$0xff]  ;;  %v342_v8 = vsub.f32 %v60_v1, %v201_v2  ;;  %v203_v12 = vld [vmem:[#allocation5 + $0x88] sm:$0xff] }
  0x32   :  { %v1462_v39 = vadd.f32 %v1461_v34, %v472_v28  ;;  %v481_v9 = vmul.f32 %v340_v62, %v340_v62  ;;  %v62_v11 = vld [vmem:[#allocation2 + $0x88] sm:$0xff]  ;;  %v343_v13 = vsub.f32 %v61_v6, %v202_v7  ;;  %v63_v16 = vld [vmem:[#allocation2 + $0x90] sm:$0xff]  ;;  %v204_v17 = vld [vmem:[#allocation5 + $0x90] sm:$0xff] }
  0x33   :  { %v482_v14 = vmul.f32 %v341_v3, %v341_v3  ;;  %v344_v18 = vsub.f32 %v62_v11, %v203_v12  ;;  %v483_v19 = vmul.f32 %v342_v8, %v342_v8  ;;  %v64_v21 = vld [vmem:[#allocation2 + $0x98] sm:$0xff]  ;;  %v205_v22 = vld [vmem:[#allocation5 + $0x98] sm:$0xff]  ;;  %v345_v23 = vsub.f32 %v63_v16, %v204_v17  ;;  %v206_v27 = vld [vmem:[#allocation5 + $0xa0] sm:$0xff] }
  0x34   :  { %v1463_v44 = vadd.f32 %v1462_v39, %v473_v33  ;;  %v484_v24 = vmul.f32 %v343_v13, %v343_v13  ;;  %v65_v26 = vld [vmem:[#allocation2 + $0xa0] sm:$0xff]  ;;  %v346_v28 = vsub.f32 %v64_v21, %v205_v22  ;;  %v66_v31 = vld [vmem:[#allocation2 + $0xa8] sm:$0xff]  ;;  %v207_v32 = vld [vmem:[#allocation5 + $0xa8] sm:$0xff] }
  0x35   :  { %v485_v29 = vmul.f32 %v344_v18, %v344_v18  ;;  %v347_v33 = vsub.f32 %v65_v26, %v206_v27  ;;  %v486_v34 = vmul.f32 %v345_v23, %v345_v23  ;;  %v67_v36 = vld [vmem:[#allocation2 + $0xb0] sm:$0xff]  ;;  %v208_v37 = vld [vmem:[#allocation5 + $0xb0] sm:$0xff]  ;;  %v209_v42 = vld [vmem:[#allocation5 + $0xb8] sm:$0xff] }
  0x36   :  { %v1464_v49 = vadd.f32 %v1463_v44, %v474_v38  ;;  %v348_v38 = vsub.f32 %v66_v31, %v207_v32  ;;  %v487_v39 = vmul.f32 %v346_v28, %v346_v28  ;;  %v68_v41 = vld [vmem:[#allocation2 + $0xb8] sm:$0xff]  ;;  %v69_v46 = vld [vmem:[#allocation2 + $0xc0] sm:$0xff]  ;;  %v210_v47 = vld [vmem:[#allocation5 + $0xc0] sm:$0xff] }
  0x37   :  { %v488_v44 = vmul.f32 %v347_v33, %v347_v33  ;;  %v70_v51 = vld [vmem:[#allocation2 + $0xc8] sm:$0xff]  ;;  %v211_v52 = vld [vmem:[#allocation5 + $0xc8] sm:$0xff]  ;;  %v212_v57 = vld [vmem:[#allocation5 + $0xd0] sm:$0xff] }
  0x38   :  { %v1465_v54 = vadd.f32 %v1464_v49, %v475_v43  ;;  %v349_v43 = vsub.f32 %v67_v36, %v208_v37  ;;  %v489_v49 = vmul.f32 %v348_v38, %v348_v38  ;;  %v71_v56 = vld [vmem:[#allocation2 + $0xd0] sm:$0xff]  ;;  %v72_v61 = vld [vmem:[#allocation2 + $0xd8] sm:$0xff]  ;;  %v213_v62 = vld [vmem:[#allocation5 + $0xd8] sm:$0xff] }
  0x39   :  { %v73_v2 = vld [vmem:[#allocation2 + $0xe0] sm:$0xff]  ;;  %v214_v3 = vld [vmem:[#allocation5 + $0xe0] sm:$0xff]  ;;  %v215_v8 = vld [vmem:[#allocation5 + $0xe8] sm:$0xff] }
  0x3a   :  { %v1466_v59 = vadd.f32 %v1465_v54, %v476_v48  ;;  %v350_v48 = vsub.f32 %v68_v41, %v209_v42  ;;  %v490_v54 = vmul.f32 %v349_v43, %v349_v43  ;;  %v74_v7 = vld [vmem:[#allocation2 + $0xe8] sm:$0xff]  ;;  %v75_v12 = vld [vmem:[#allocation2 + $0xf0] sm:$0xff]  ;;  %v216_v13 = vld [vmem:[#allocation5 + $0xf0] sm:$0xff] }
  0x3b   :  { %v76_v17 = vld [vmem:[#allocation2 + $0xf8] sm:$0xff]  ;;  %v217_v18 = vld [vmem:[#allocation5 + $0xf8] sm:$0xff]  ;;  %v218_v23 = vld [vmem:[#allocation5 + $0x100] sm:$0xff] }
  0x3c   :  { %v1467_v0 = vadd.f32 %v1466_v59, %v477_v53  ;;  %v351_v53 = vsub.f32 %v69_v46, %v210_v47  ;;  %v491_v59 = vmul.f32 %v350_v48, %v350_v48  ;;  %v77_v22 = vld [vmem:[#allocation2 + $0x100] sm:$0xff]  ;;  %v78_v27 = vld [vmem:[#allocation2 + $0x108] sm:$0xff]  ;;  %v219_v28 = vld [vmem:[#allocation5 + $0x108] sm:$0xff] }
  0x3d   :  { %v79_v32 = vld [vmem:[#allocation2 + $0x110] sm:$0xff]  ;;  %v220_v33 = vld [vmem:[#allocation5 + $0x110] sm:$0xff]  ;;  %v221_v38 = vld [vmem:[#allocation5 + $0x118] sm:$0xff] }
  0x3e   :  { %v1468_v5 = vadd.f32 %v1467_v0, %v478_v58  ;;  %v352_v58 = vsub.f32 %v70_v51, %v211_v52  ;;  %v492_v0 = vmul.f32 %v351_v53, %v351_v53  ;;  %v80_v37 = vld [vmem:[#allocation2 + $0x118] sm:$0xff]  ;;  %v81_v42 = vld [vmem:[#allocation2 + $0x120] sm:$0xff]  ;;  %v222_v43 = vld [vmem:[#allocation5 + $0x120] sm:$0xff] }
  0x3f   :  { %v82_v47 = vld [vmem:[#allocation2 + $0x128] sm:$0xff]  ;;  %v223_v48 = vld [vmem:[#allocation5 + $0x128] sm:$0xff]  ;;  %v224_v53 = vld [vmem:[#allocation5 + $0x130] sm:$0xff] }
  0x40   :  { %v1469_v10 = vadd.f32 %v1468_v5, %v479_v63  ;;  %v353_v63 = vsub.f32 %v71_v56, %v212_v57  ;;  %v493_v5 = vmul.f32 %v352_v58, %v352_v58  ;;  %v83_v52 = vld [vmem:[#allocation2 + $0x130] sm:$0xff]  ;;  %v84_v57 = vld [vmem:[#allocation2 + $0x138] sm:$0xff]  ;;  %v225_v58 = vld [vmem:[#allocation5 + $0x138] sm:$0xff] }
  0x42   :  { %v1470_v15 = vadd.f32 %v1469_v10, %v480_v4  ;;  %v354_v4 = vsub.f32 %v72_v61, %v213_v62  ;;  %v494_v10 = vmul.f32 %v353_v63, %v353_v63  ;;  %v85_v62 = vld [vmem:[#allocation2 + $0x140] sm:$0xff]  ;;  %v226_v63 = vld [vmem:[#allocation5 + $0x140] sm:$0xff] }
  0x44   :  { %v1471_v20 = vadd.f32 %v1470_v15, %v481_v9  ;;  %v355_v9 = vsub.f32 %v73_v2, %v214_v3  ;;  %v495_v15 = vmul.f32 %v354_v4, %v354_v4  ;;  %v86_v3 = vld [vmem:[#allocation2 + $0x148] sm:$0xff]  ;;  %v227_v4 = vld [vmem:[#allocation5 + $0x148] sm:$0xff] }
  0x46   :  { %v1472_v25 = vadd.f32 %v1471_v20, %v482_v14  ;;  %v356_v14 = vsub.f32 %v74_v7, %v215_v8  ;;  %v496_v20 = vmul.f32 %v355_v9, %v355_v9  ;;  %v87_v8 = vld [vmem:[#allocation2 + $0x150] sm:$0xff]  ;;  %v228_v9 = vld [vmem:[#allocation5 + $0x150] sm:$0xff] }
  0x48   :  { %v1473_v30 = vadd.f32 %v1472_v25, %v483_v19  ;;  %v357_v19 = vsub.f32 %v75_v12, %v216_v13  ;;  %v497_v25 = vmul.f32 %v356_v14, %v356_v14  ;;  %v88_v13 = vld [vmem:[#allocation2 + $0x158] sm:$0xff]  ;;  %v229_v14 = vld [vmem:[#allocation5 + $0x158] sm:$0xff] }
  0x4a   :  { %v1474_v35 = vadd.f32 %v1473_v30, %v484_v24  ;;  %v358_v24 = vsub.f32 %v76_v17, %v217_v18  ;;  %v498_v30 = vmul.f32 %v357_v19, %v357_v19  ;;  %v89_v18 = vld [vmem:[#allocation2 + $0x160] sm:$0xff]  ;;  %v230_v19 = vld [vmem:[#allocation5 + $0x160] sm:$0xff] }
  0x4c   :  { %v1475_v40 = vadd.f32 %v1474_v35, %v485_v29  ;;  %v359_v29 = vsub.f32 %v77_v22, %v218_v23  ;;  %v499_v35 = vmul.f32 %v358_v24, %v358_v24  ;;  %v90_v23 = vld [vmem:[#allocation2 + $0x168] sm:$0xff]  ;;  %v231_v24 = vld [vmem:[#allocation5 + $0x168] sm:$0xff] }
  0x4e   :  { %v1476_v45 = vadd.f32 %v1475_v40, %v486_v34  ;;  %v360_v34 = vsub.f32 %v78_v27, %v219_v28  ;;  %v500_v40 = vmul.f32 %v359_v29, %v359_v29  ;;  %v91_v28 = vld [vmem:[#allocation2 + $0x170] sm:$0xff]  ;;  %v232_v29 = vld [vmem:[#allocation5 + $0x170] sm:$0xff] }
  0x50   :  { %v1477_v50 = vadd.f32 %v1476_v45, %v487_v39  ;;  %v361_v39 = vsub.f32 %v79_v32, %v220_v33  ;;  %v501_v45 = vmul.f32 %v360_v34, %v360_v34  ;;  %v92_v33 = vld [vmem:[#allocation2 + $0x178] sm:$0xff]  ;;  %v233_v34 = vld [vmem:[#allocation5 + $0x178] sm:$0xff] }
  0x52   :  { %v1478_v55 = vadd.f32 %v1477_v50, %v488_v44  ;;  %v362_v44 = vsub.f32 %v80_v37, %v221_v38  ;;  %v502_v50 = vmul.f32 %v361_v39, %v361_v39  ;;  %v93_v38 = vld [vmem:[#allocation2 + $0x180] sm:$0xff]  ;;  %v234_v39 = vld [vmem:[#allocation5 + $0x180] sm:$0xff] }
  0x54   :  { %v1479_v60 = vadd.f32 %v1478_v55, %v489_v49  ;;  %v363_v49 = vsub.f32 %v81_v42, %v222_v43  ;;  %v503_v55 = vmul.f32 %v362_v44, %v362_v44  ;;  %v94_v43 = vld [vmem:[#allocation2 + $0x188] sm:$0xff]  ;;  %v235_v44 = vld [vmem:[#allocation5 + $0x188] sm:$0xff] }
  0x56   :  { %v1480_v1 = vadd.f32 %v1479_v60, %v490_v54  ;;  %v364_v54 = vsub.f32 %v82_v47, %v223_v48  ;;  %v504_v60 = vmul.f32 %v363_v49, %v363_v49  ;;  %v95_v48 = vld [vmem:[#allocation2 + $0x190] sm:$0xff]  ;;  %v236_v49 = vld [vmem:[#allocation5 + $0x190] sm:$0xff] }
  0x58   :  { %v1481_v6 = vadd.f32 %v1480_v1, %v491_v59  ;;  %v365_v59 = vsub.f32 %v83_v52, %v224_v53  ;;  %v505_v1 = vmul.f32 %v364_v54, %v364_v54  ;;  %v96_v53 = vld [vmem:[#allocation2 + $0x198] sm:$0xff]  ;;  %v237_v54 = vld [vmem:[#allocation5 + $0x198] sm:$0xff] }
  0x5a   :  { %v1482_v11 = vadd.f32 %v1481_v6, %v492_v0  ;;  %v366_v0 = vsub.f32 %v84_v57, %v225_v58  ;;  %v506_v6 = vmul.f32 %v365_v59, %v365_v59  ;;  %v97_v58 = vld [vmem:[#allocation2 + $0x1a0] sm:$0xff]  ;;  %v238_v59 = vld [vmem:[#allocation5 + $0x1a0] sm:$0xff] }
  0x5c   :  { %v1483_v16 = vadd.f32 %v1482_v11, %v493_v5  ;;  %v367_v5 = vsub.f32 %v85_v62, %v226_v63  ;;  %v507_v11 = vmul.f32 %v366_v0, %v366_v0  ;;  %v98_v63 = vld [vmem:[#allocation2 + $0x1a8] sm:$0xff]  ;;  %v239_v0 = vld [vmem:[#allocation5 + $0x1a8] sm:$0xff] }
  0x5e   :  { %v1484_v21 = vadd.f32 %v1483_v16, %v494_v10  ;;  %v368_v10 = vsub.f32 %v86_v3, %v227_v4  ;;  %v508_v16 = vmul.f32 %v367_v5, %v367_v5  ;;  %v99_v4 = vld [vmem:[#allocation2 + $0x1b0] sm:$0xff]  ;;  %v240_v5 = vld [vmem:[#allocation5 + $0x1b0] sm:$0xff] }
  0x60   :  { %v1485_v26 = vadd.f32 %v1484_v21, %v495_v15  ;;  %v369_v15 = vsub.f32 %v87_v8, %v228_v9  ;;  %v509_v21 = vmul.f32 %v368_v10, %v368_v10  ;;  %v100_v9 = vld [vmem:[#allocation2 + $0x1b8] sm:$0xff]  ;;  %v241_v10 = vld [vmem:[#allocation5 + $0x1b8] sm:$0xff] }
  0x62   :  { %v1486_v31 = vadd.f32 %v1485_v26, %v496_v20  ;;  %v370_v20 = vsub.f32 %v88_v13, %v229_v14  ;;  %v510_v26 = vmul.f32 %v369_v15, %v369_v15  ;;  %v101_v14 = vld [vmem:[#allocation2 + $0x1c0] sm:$0xff]  ;;  %v242_v15 = vld [vmem:[#allocation5 + $0x1c0] sm:$0xff] }
  0x64   :  { %v1487_v36 = vadd.f32 %v1486_v31, %v497_v25  ;;  %v371_v25 = vsub.f32 %v89_v18, %v230_v19  ;;  %v511_v31 = vmul.f32 %v370_v20, %v370_v20  ;;  %v102_v19 = vld [vmem:[#allocation2 + $0x1c8] sm:$0xff]  ;;  %v243_v20 = vld [vmem:[#allocation5 + $0x1c8] sm:$0xff] }
  0x66   :  { %v1488_v41 = vadd.f32 %v1487_v36, %v498_v30  ;;  %v372_v30 = vsub.f32 %v90_v23, %v231_v24  ;;  %v512_v36 = vmul.f32 %v371_v25, %v371_v25  ;;  %v103_v24 = vld [vmem:[#allocation2 + $0x1d0] sm:$0xff]  ;;  %v244_v25 = vld [vmem:[#allocation5 + $0x1d0] sm:$0xff] }
  0x68   :  { %v1489_v46 = vadd.f32 %v1488_v41, %v499_v35  ;;  %v373_v35 = vsub.f32 %v91_v28, %v232_v29  ;;  %v513_v41 = vmul.f32 %v372_v30, %v372_v30  ;;  %v104_v29 = vld [vmem:[#allocation2 + $0x1d8] sm:$0xff]  ;;  %v245_v30 = vld [vmem:[#allocation5 + $0x1d8] sm:$0xff] }
  0x6a   :  { %v1490_v51 = vadd.f32 %v1489_v46, %v500_v40  ;;  %v374_v40 = vsub.f32 %v92_v33, %v233_v34  ;;  %v514_v46 = vmul.f32 %v373_v35, %v373_v35  ;;  %v105_v34 = vld [vmem:[#allocation2 + $0x1e0] sm:$0xff]  ;;  %v246_v35 = vld [vmem:[#allocation5 + $0x1e0] sm:$0xff] }
  0x6c   :  { %v1491_v56 = vadd.f32 %v1490_v51, %v501_v45  ;;  %v375_v45 = vsub.f32 %v93_v38, %v234_v39  ;;  %v515_v51 = vmul.f32 %v374_v40, %v374_v40  ;;  %v106_v39 = vld [vmem:[#allocation2 + $0x1e8] sm:$0xff]  ;;  %v247_v40 = vld [vmem:[#allocation5 + $0x1e8] sm:$0xff] }
  0x6e   :  { %v1492_v61 = vadd.f32 %v1491_v56, %v502_v50  ;;  %v376_v50 = vsub.f32 %v94_v43, %v235_v44  ;;  %v516_v56 = vmul.f32 %v375_v45, %v375_v45  ;;  %v107_v44 = vld [vmem:[#allocation2 + $0x1f0] sm:$0xff]  ;;  %v248_v45 = vld [vmem:[#allocation5 + $0x1f0] sm:$0xff] }
  0x70   :  { %v1493_v2 = vadd.f32 %v1492_v61, %v503_v55  ;;  %v377_v55 = vsub.f32 %v95_v48, %v236_v49  ;;  %v517_v61 = vmul.f32 %v376_v50, %v376_v50  ;;  %v108_v49 = vld [vmem:[#allocation2 + $0x1f8] sm:$0xff]  ;;  %v249_v50 = vld [vmem:[#allocation5 + $0x1f8] sm:$0xff] }
  0x72   :  { %v1494_v7 = vadd.f32 %v1493_v2, %v504_v60  ;;  %v378_v60 = vsub.f32 %v96_v53, %v237_v54  ;;  %v518_v2 = vmul.f32 %v377_v55, %v377_v55  ;;  %v109_v54 = vld [vmem:[#allocation2 + $0x200] sm:$0xff]  ;;  %v250_v55 = vld [vmem:[#allocation5 + $0x200] sm:$0xff] }
  0x74   :  { %v1495_v12 = vadd.f32 %v1494_v7, %v505_v1  ;;  %v379_v1 = vsub.f32 %v97_v58, %v238_v59  ;;  %v519_v7 = vmul.f32 %v378_v60, %v378_v60  ;;  %v110_v59 = vld [vmem:[#allocation2 + $0x208] sm:$0xff]  ;;  %v251_v60 = vld [vmem:[#allocation5 + $0x208] sm:$0xff] }
  0x76   :  { %v1496_v17 = vadd.f32 %v1495_v12, %v506_v6  ;;  %v380_v6 = vsub.f32 %v98_v63, %v239_v0  ;;  %v520_v12 = vmul.f32 %v379_v1, %v379_v1  ;;  %v111_v0 = vld [vmem:[#allocation2 + $0x210] sm:$0xff]  ;;  %v252_v1 = vld [vmem:[#allocation5 + $0x210] sm:$0xff] }
  0x78   :  { %v1497_v22 = vadd.f32 %v1496_v17, %v507_v11  ;;  %v381_v11 = vsub.f32 %v99_v4, %v240_v5  ;;  %v521_v17 = vmul.f32 %v380_v6, %v380_v6  ;;  %v112_v5 = vld [vmem:[#allocation2 + $0x218] sm:$0xff]  ;;  %v253_v6 = vld [vmem:[#allocation5 + $0x218] sm:$0xff] }
  0x7a   :  { %v1498_v27 = vadd.f32 %v1497_v22, %v508_v16  ;;  %v382_v16 = vsub.f32 %v100_v9, %v241_v10  ;;  %v522_v22 = vmul.f32 %v381_v11, %v381_v11  ;;  %v113_v10 = vld [vmem:[#allocation2 + $0x220] sm:$0xff]  ;;  %v254_v11 = vld [vmem:[#allocation5 + $0x220] sm:$0xff] }
  0x7c   :  { %v1499_v32 = vadd.f32 %v1498_v27, %v509_v21  ;;  %v383_v21 = vsub.f32 %v101_v14, %v242_v15  ;;  %v523_v27 = vmul.f32 %v382_v16, %v382_v16  ;;  %v114_v15 = vld [vmem:[#allocation2 + $0x228] sm:$0xff]  ;;  %v255_v16 = vld [vmem:[#allocation5 + $0x228] sm:$0xff] }
  0x7e   :  { %v1500_v37 = vadd.f32 %v1499_v32, %v510_v26  ;;  %v384_v26 = vsub.f32 %v102_v19, %v243_v20  ;;  %v524_v32 = vmul.f32 %v383_v21, %v383_v21  ;;  %v115_v20 = vld [vmem:[#allocation2 + $0x230] sm:$0xff]  ;;  %v256_v21 = vld [vmem:[#allocation5 + $0x230] sm:$0xff] }
  0x80   :  { %v1501_v42 = vadd.f32 %v1500_v37, %v511_v31  ;;  %v385_v31 = vsub.f32 %v103_v24, %v244_v25  ;;  %v525_v37 = vmul.f32 %v384_v26, %v384_v26  ;;  %v116_v25 = vld [vmem:[#allocation2 + $0x238] sm:$0xff]  ;;  %v257_v26 = vld [vmem:[#allocation5 + $0x238] sm:$0xff] }
  0x82   :  { %v1502_v47 = vadd.f32 %v1501_v42, %v512_v36  ;;  %v386_v36 = vsub.f32 %v104_v29, %v245_v30  ;;  %v526_v42 = vmul.f32 %v385_v31, %v385_v31  ;;  %v117_v30 = vld [vmem:[#allocation2 + $0x240] sm:$0xff]  ;;  %v258_v31 = vld [vmem:[#allocation5 + $0x240] sm:$0xff] }
  0x84   :  { %v1503_v52 = vadd.f32 %v1502_v47, %v513_v41  ;;  %v387_v41 = vsub.f32 %v105_v34, %v246_v35  ;;  %v527_v47 = vmul.f32 %v386_v36, %v386_v36  ;;  %v118_v35 = vld [vmem:[#allocation2 + $0x248] sm:$0xff]  ;;  %v259_v36 = vld [vmem:[#allocation5 + $0x248] sm:$0xff] }
  0x86   :  { %v1504_v57 = vadd.f32 %v1503_v52, %v514_v46  ;;  %v388_v46 = vsub.f32 %v106_v39, %v247_v40  ;;  %v528_v52 = vmul.f32 %v387_v41, %v387_v41  ;;  %v119_v40 = vld [vmem:[#allocation2 + $0x250] sm:$0xff]  ;;  %v260_v41 = vld [vmem:[#allocation5 + $0x250] sm:$0xff] }
  0x88   :  { %v1505_v62 = vadd.f32 %v1504_v57, %v515_v51  ;;  %v389_v51 = vsub.f32 %v107_v44, %v248_v45  ;;  %v529_v57 = vmul.f32 %v388_v46, %v388_v46  ;;  %v120_v45 = vld [vmem:[#allocation2 + $0x258] sm:$0xff]  ;;  %v261_v46 = vld [vmem:[#allocation5 + $0x258] sm:$0xff] }
  0x8a   :  { %v1506_v3 = vadd.f32 %v1505_v62, %v516_v56  ;;  %v390_v56 = vsub.f32 %v108_v49, %v249_v50  ;;  %v530_v62 = vmul.f32 %v389_v51, %v389_v51  ;;  %v121_v50 = vld [vmem:[#allocation2 + $0x260] sm:$0xff]  ;;  %v262_v51 = vld [vmem:[#allocation5 + $0x260] sm:$0xff] }
  0x8c   :  { %v1507_v8 = vadd.f32 %v1506_v3, %v517_v61  ;;  %v391_v61 = vsub.f32 %v109_v54, %v250_v55  ;;  %v531_v3 = vmul.f32 %v390_v56, %v390_v56  ;;  %v122_v55 = vld [vmem:[#allocation2 + $0x268] sm:$0xff]  ;;  %v263_v56 = vld [vmem:[#allocation5 + $0x268] sm:$0xff] }
  0x8e   :  { %v1508_v13 = vadd.f32 %v1507_v8, %v518_v2  ;;  %v392_v2 = vsub.f32 %v110_v59, %v251_v60  ;;  %v532_v8 = vmul.f32 %v391_v61, %v391_v61  ;;  %v123_v60 = vld [vmem:[#allocation2 + $0x270] sm:$0xff]  ;;  %v264_v61 = vld [vmem:[#allocation5 + $0x270] sm:$0xff] }
  0x90   :  { %v1509_v18 = vadd.f32 %v1508_v13, %v519_v7  ;;  %v393_v7 = vsub.f32 %v111_v0, %v252_v1  ;;  %v533_v13 = vmul.f32 %v392_v2, %v392_v2  ;;  %v124_v1 = vld [vmem:[#allocation2 + $0x278] sm:$0xff]  ;;  %v265_v2 = vld [vmem:[#allocation5 + $0x278] sm:$0xff] }
  0x92   :  { %v1510_v23 = vadd.f32 %v1509_v18, %v520_v12  ;;  %v394_v12 = vsub.f32 %v112_v5, %v253_v6  ;;  %v534_v18 = vmul.f32 %v393_v7, %v393_v7  ;;  %v125_v6 = vld [vmem:[#allocation2 + $0x280] sm:$0xff]  ;;  %v266_v7 = vld [vmem:[#allocation5 + $0x280] sm:$0xff] }
  0x94   :  { %v1511_v28 = vadd.f32 %v1510_v23, %v521_v17  ;;  %v395_v17 = vsub.f32 %v113_v10, %v254_v11  ;;  %v535_v23 = vmul.f32 %v394_v12, %v394_v12  ;;  %v126_v11 = vld [vmem:[#allocation2 + $0x288] sm:$0xff]  ;;  %v267_v12 = vld [vmem:[#allocation5 + $0x288] sm:$0xff] }
  0x96   :  { %v1512_v33 = vadd.f32 %v1511_v28, %v522_v22  ;;  %v396_v22 = vsub.f32 %v114_v15, %v255_v16  ;;  %v536_v28 = vmul.f32 %v395_v17, %v395_v17  ;;  %v127_v16 = vld [vmem:[#allocation2 + $0x290] sm:$0xff]  ;;  %v268_v17 = vld [vmem:[#allocation5 + $0x290] sm:$0xff] }
  0x98   :  { %v1513_v38 = vadd.f32 %v1512_v33, %v523_v27  ;;  %v397_v27 = vsub.f32 %v115_v20, %v256_v21  ;;  %v537_v33 = vmul.f32 %v396_v22, %v396_v22  ;;  %v128_v21 = vld [vmem:[#allocation2 + $0x298] sm:$0xff]  ;;  %v269_v22 = vld [vmem:[#allocation5 + $0x298] sm:$0xff] }
  0x9a   :  { %v1514_v43 = vadd.f32 %v1513_v38, %v524_v32  ;;  %v398_v32 = vsub.f32 %v116_v25, %v257_v26  ;;  %v538_v38 = vmul.f32 %v397_v27, %v397_v27  ;;  %v129_v26 = vld [vmem:[#allocation2 + $0x2a0] sm:$0xff]  ;;  %v270_v27 = vld [vmem:[#allocation5 + $0x2a0] sm:$0xff] }
  0x9c   :  { %v1515_v48 = vadd.f32 %v1514_v43, %v525_v37  ;;  %v399_v37 = vsub.f32 %v117_v30, %v258_v31  ;;  %v539_v43 = vmul.f32 %v398_v32, %v398_v32  ;;  %v130_v31 = vld [vmem:[#allocation2 + $0x2a8] sm:$0xff]  ;;  %v271_v32 = vld [vmem:[#allocation5 + $0x2a8] sm:$0xff] }
  0x9e   :  { %v1516_v53 = vadd.f32 %v1515_v48, %v526_v42  ;;  %v400_v42 = vsub.f32 %v118_v35, %v259_v36  ;;  %v540_v48 = vmul.f32 %v399_v37, %v399_v37  ;;  %v131_v36 = vld [vmem:[#allocation2 + $0x2b0] sm:$0xff]  ;;  %v272_v37 = vld [vmem:[#allocation5 + $0x2b0] sm:$0xff] }
  0xa0   :  { %v1517_v58 = vadd.f32 %v1516_v53, %v527_v47  ;;  %v401_v47 = vsub.f32 %v119_v40, %v260_v41  ;;  %v541_v53 = vmul.f32 %v400_v42, %v400_v42  ;;  %v132_v41 = vld [vmem:[#allocation2 + $0x2b8] sm:$0xff]  ;;  %v273_v42 = vld [vmem:[#allocation5 + $0x2b8] sm:$0xff] }
  0xa2   :  { %v1518_v63 = vadd.f32 %v1517_v58, %v528_v52  ;;  %v402_v52 = vsub.f32 %v120_v45, %v261_v46  ;;  %v542_v58 = vmul.f32 %v401_v47, %v401_v47  ;;  %v133_v46 = vld [vmem:[#allocation2 + $0x2c0] sm:$0xff]  ;;  %v274_v47 = vld [vmem:[#allocation5 + $0x2c0] sm:$0xff] }
  0xa4   :  { %v1519_v4 = vadd.f32 %v1518_v63, %v529_v57  ;;  %v403_v57 = vsub.f32 %v121_v50, %v262_v51  ;;  %v543_v63 = vmul.f32 %v402_v52, %v402_v52  ;;  %v134_v51 = vld [vmem:[#allocation2 + $0x2c8] sm:$0xff]  ;;  %v275_v52 = vld [vmem:[#allocation5 + $0x2c8] sm:$0xff] }
  0xa6   :  { %v1520_v9 = vadd.f32 %v1519_v4, %v530_v62  ;;  %v404_v62 = vsub.f32 %v122_v55, %v263_v56  ;;  %v544_v4 = vmul.f32 %v403_v57, %v403_v57  ;;  %v135_v56 = vld [vmem:[#allocation2 + $0x2d0] sm:$0xff]  ;;  %v276_v57 = vld [vmem:[#allocation5 + $0x2d0] sm:$0xff] }
  0xa8   :  { %v1521_v14 = vadd.f32 %v1520_v9, %v531_v3  ;;  %v405_v3 = vsub.f32 %v123_v60, %v264_v61  ;;  %v545_v9 = vmul.f32 %v404_v62, %v404_v62  ;;  %v136_v61 = vld [vmem:[#allocation2 + $0x2d8] sm:$0xff]  ;;  %v277_v62 = vld [vmem:[#allocation5 + $0x2d8] sm:$0xff] }
  0xaa   :  { %v1522_v19 = vadd.f32 %v1521_v14, %v532_v8  ;;  %v406_v8 = vsub.f32 %v124_v1, %v265_v2  ;;  %v546_v14 = vmul.f32 %v405_v3, %v405_v3  ;;  %v137_v2 = vld [vmem:[#allocation2 + $0x2e0] sm:$0xff]  ;;  %v278_v3 = vld [vmem:[#allocation5 + $0x2e0] sm:$0xff] }
  0xac   :  { %v1523_v24 = vadd.f32 %v1522_v19, %v533_v13  ;;  %v407_v13 = vsub.f32 %v125_v6, %v266_v7  ;;  %v547_v19 = vmul.f32 %v406_v8, %v406_v8  ;;  %v138_v7 = vld [vmem:[#allocation2 + $0x2e8] sm:$0xff]  ;;  %v279_v8 = vld [vmem:[#allocation5 + $0x2e8] sm:$0xff] }
  0xae   :  { %v1524_v29 = vadd.f32 %v1523_v24, %v534_v18  ;;  %v408_v18 = vsub.f32 %v126_v11, %v267_v12  ;;  %v548_v24 = vmul.f32 %v407_v13, %v407_v13  ;;  %v139_v12 = vld [vmem:[#allocation2 + $0x2f0] sm:$0xff]  ;;  %v280_v13 = vld [vmem:[#allocation5 + $0x2f0] sm:$0xff] }
  0xb0   :  { %v1525_v34 = vadd.f32 %v1524_v29, %v535_v23  ;;  %v409_v23 = vsub.f32 %v127_v16, %v268_v17  ;;  %v549_v29 = vmul.f32 %v408_v18, %v408_v18  ;;  %v140_v17 = vld [vmem:[#allocation2 + $0x2f8] sm:$0xff]  ;;  %v281_v18 = vld [vmem:[#allocation5 + $0x2f8] sm:$0xff] }
  0xb2   :  { %v1526_v39 = vadd.f32 %v1525_v34, %v536_v28  ;;  %v410_v28 = vsub.f32 %v128_v21, %v269_v22  ;;  %v550_v34 = vmul.f32 %v409_v23, %v409_v23  ;;  %v141_v22 = vld [vmem:[#allocation2 + $0x300] sm:$0xff]  ;;  %v282_v23 = vld [vmem:[#allocation5 + $0x300] sm:$0xff] }
  0xb4   :  { %v1527_v44 = vadd.f32 %v1526_v39, %v537_v33  ;;  %v411_v33 = vsub.f32 %v129_v26, %v270_v27  ;;  %v551_v39 = vmul.f32 %v410_v28, %v410_v28  ;;  %v142_v27 = vld [vmem:[#allocation2 + $0x308] sm:$0xff]  ;;  %v283_v28 = vld [vmem:[#allocation5 + $0x308] sm:$0xff] }
  0xb6   :  { %v1528_v49 = vadd.f32 %v1527_v44, %v538_v38  ;;  %v412_v38 = vsub.f32 %v130_v31, %v271_v32  ;;  %v552_v44 = vmul.f32 %v411_v33, %v411_v33  ;;  %v143_v32 = vld [vmem:[#allocation2 + $0x310] sm:$0xff]  ;;  %v284_v33 = vld [vmem:[#allocation5 + $0x310] sm:$0xff] }
  0xb8   :  { %v1529_v54 = vadd.f32 %v1528_v49, %v539_v43  ;;  %v413_v43 = vsub.f32 %v131_v36, %v272_v37  ;;  %v553_v49 = vmul.f32 %v412_v38, %v412_v38  ;;  %v144_v37 = vld [vmem:[#allocation2 + $0x318] sm:$0xff]  ;;  %v285_v38 = vld [vmem:[#allocation5 + $0x318] sm:$0xff] }
  0xba   :  { %v1530_v59 = vadd.f32 %v1529_v54, %v540_v48  ;;  %v414_v48 = vsub.f32 %v132_v41, %v273_v42  ;;  %v554_v54 = vmul.f32 %v413_v43, %v413_v43  ;;  %v145_v42 = vld [vmem:[#allocation2 + $0x320] sm:$0xff]  ;;  %v286_v43 = vld [vmem:[#allocation5 + $0x320] sm:$0xff] }
  0xbc   :  { %v1531_v0 = vadd.f32 %v1530_v59, %v541_v53  ;;  %v415_v53 = vsub.f32 %v133_v46, %v274_v47  ;;  %v555_v59 = vmul.f32 %v414_v48, %v414_v48  ;;  %v146_v47 = vld [vmem:[#allocation2 + $0x328] sm:$0xff]  ;;  %v287_v48 = vld [vmem:[#allocation5 + $0x328] sm:$0xff] }
  0xbe   :  { %v1532_v5 = vadd.f32 %v1531_v0, %v542_v58  ;;  %v416_v58 = vsub.f32 %v134_v51, %v275_v52  ;;  %v556_v0 = vmul.f32 %v415_v53, %v415_v53  ;;  %v147_v52 = vld [vmem:[#allocation2 + $0x330] sm:$0xff]  ;;  %v288_v53 = vld [vmem:[#allocation5 + $0x330] sm:$0xff] }
  0xc0   :  { %v1533_v10 = vadd.f32 %v1532_v5, %v543_v63  ;;  %v417_v63 = vsub.f32 %v135_v56, %v276_v57  ;;  %v557_v5 = vmul.f32 %v416_v58, %v416_v58  ;;  %v148_v57 = vld [vmem:[#allocation2 + $0x338] sm:$0xff]  ;;  %v289_v58 = vld [vmem:[#allocation5 + $0x338] sm:$0xff] }
  0xc2   :  { %v1534_v15 = vadd.f32 %v1533_v10, %v544_v4  ;;  %v418_v4 = vsub.f32 %v136_v61, %v277_v62  ;;  %v558_v10 = vmul.f32 %v417_v63, %v417_v63  ;;  %v149_v62 = vld [vmem:[#allocation2 + $0x340] sm:$0xff]  ;;  %v290_v63 = vld [vmem:[#allocation5 + $0x340] sm:$0xff] }
  0xc4   :  { %v1535_v20 = vadd.f32 %v1534_v15, %v545_v9  ;;  %v419_v9 = vsub.f32 %v137_v2, %v278_v3  ;;  %v559_v15 = vmul.f32 %v418_v4, %v418_v4  ;;  %v150_v3 = vld [vmem:[#allocation2 + $0x348] sm:$0xff]  ;;  %v291_v4 = vld [vmem:[#allocation5 + $0x348] sm:$0xff] }
  0xc6   :  { %v1536_v25 = vadd.f32 %v1535_v20, %v546_v14  ;;  %v420_v14 = vsub.f32 %v138_v7, %v279_v8  ;;  %v560_v20 = vmul.f32 %v419_v9, %v419_v9  ;;  %v151_v8 = vld [vmem:[#allocation2 + $0x350] sm:$0xff]  ;;  %v292_v9 = vld [vmem:[#allocation5 + $0x350] sm:$0xff] }
  0xc8   :  { %v1537_v30 = vadd.f32 %v1536_v25, %v547_v19  ;;  %v421_v19 = vsub.f32 %v139_v12, %v280_v13  ;;  %v561_v25 = vmul.f32 %v420_v14, %v420_v14  ;;  %v152_v13 = vld [vmem:[#allocation2 + $0x358] sm:$0xff]  ;;  %v293_v14 = vld [vmem:[#allocation5 + $0x358] sm:$0xff] }
  0xca   :  { %v1538_v35 = vadd.f32 %v1537_v30, %v548_v24  ;;  %v422_v24 = vsub.f32 %v140_v17, %v281_v18  ;;  %v562_v30 = vmul.f32 %v421_v19, %v421_v19  ;;  %v153_v18 = vld [vmem:[#allocation2 + $0x360] sm:$0xff]  ;;  %v294_v19 = vld [vmem:[#allocation5 + $0x360] sm:$0xff] }
  0xcc   :  { %v1539_v40 = vadd.f32 %v1538_v35, %v549_v29  ;;  %v423_v29 = vsub.f32 %v141_v22, %v282_v23  ;;  %v563_v35 = vmul.f32 %v422_v24, %v422_v24  ;;  %v154_v23 = vld [vmem:[#allocation2 + $0x368] sm:$0xff]  ;;  %v295_v24 = vld [vmem:[#allocation5 + $0x368] sm:$0xff] }
  0xce   :  { %v1540_v45 = vadd.f32 %v1539_v40, %v550_v34  ;;  %v424_v34 = vsub.f32 %v142_v27, %v283_v28  ;;  %v564_v40 = vmul.f32 %v423_v29, %v423_v29  ;;  %v155_v28 = vld [vmem:[#allocation2 + $0x370] sm:$0xff]  ;;  %v296_v29 = vld [vmem:[#allocation5 + $0x370] sm:$0xff] }
  0xd0   :  { %v1541_v50 = vadd.f32 %v1540_v45, %v551_v39  ;;  %v425_v39 = vsub.f32 %v143_v32, %v284_v33  ;;  %v565_v45 = vmul.f32 %v424_v34, %v424_v34  ;;  %v156_v33 = vld [vmem:[#allocation2 + $0x378] sm:$0xff]  ;;  %v297_v34 = vld [vmem:[#allocation5 + $0x378] sm:$0xff] }
  0xd2   :  { %v1542_v55 = vadd.f32 %v1541_v50, %v552_v44  ;;  %v426_v44 = vsub.f32 %v144_v37, %v285_v38  ;;  %v566_v50 = vmul.f32 %v425_v39, %v425_v39  ;;  %v157_v38 = vld [vmem:[#allocation2 + $0x380] sm:$0xff]  ;;  %v298_v39 = vld [vmem:[#allocation5 + $0x380] sm:$0xff] }
  0xd4   :  { %v1543_v60 = vadd.f32 %v1542_v55, %v553_v49  ;;  %v427_v49 = vsub.f32 %v145_v42, %v286_v43  ;;  %v567_v55 = vmul.f32 %v426_v44, %v426_v44  ;;  %v158_v43 = vld [vmem:[#allocation2 + $0x388] sm:$0xff]  ;;  %v299_v44 = vld [vmem:[#allocation5 + $0x388] sm:$0xff] }
  0xd6   :  { %v1544_v1 = vadd.f32 %v1543_v60, %v554_v54  ;;  %v428_v54 = vsub.f32 %v146_v47, %v287_v48  ;;  %v568_v60 = vmul.f32 %v427_v49, %v427_v49  ;;  %v159_v48 = vld [vmem:[#allocation2 + $0x390] sm:$0xff]  ;;  %v300_v49 = vld [vmem:[#allocation5 + $0x390] sm:$0xff] }
  0xd8   :  { %v1545_v6 = vadd.f32 %v1544_v1, %v555_v59  ;;  %v429_v59 = vsub.f32 %v147_v52, %v288_v53  ;;  %v569_v1 = vmul.f32 %v428_v54, %v428_v54  ;;  %v160_v53 = vld [vmem:[#allocation2 + $0x398] sm:$0xff]  ;;  %v301_v54 = vld [vmem:[#allocation5 + $0x398] sm:$0xff] }
  0xda   :  { %v1546_v11 = vadd.f32 %v1545_v6, %v556_v0  ;;  %v430_v0 = vsub.f32 %v148_v57, %v289_v58  ;;  %v570_v6 = vmul.f32 %v429_v59, %v429_v59  ;;  %v161_v58 = vld [vmem:[#allocation2 + $0x3a0] sm:$0xff]  ;;  %v302_v59 = vld [vmem:[#allocation5 + $0x3a0] sm:$0xff] }
  0xdc   :  { %v1547_v16 = vadd.f32 %v1546_v11, %v557_v5  ;;  %v431_v5 = vsub.f32 %v149_v62, %v290_v63  ;;  %v571_v11 = vmul.f32 %v430_v0, %v430_v0  ;;  %v162_v63 = vld [vmem:[#allocation2 + $0x3a8] sm:$0xff]  ;;  %v303_v0 = vld [vmem:[#allocation5 + $0x3a8] sm:$0xff] }
  0xde   :  { %v1548_v21 = vadd.f32 %v1547_v16, %v558_v10  ;;  %v432_v10 = vsub.f32 %v150_v3, %v291_v4  ;;  %v572_v16 = vmul.f32 %v431_v5, %v431_v5  ;;  %v163_v4 = vld [vmem:[#allocation2 + $0x3b0] sm:$0xff]  ;;  %v304_v5 = vld [vmem:[#allocation5 + $0x3b0] sm:$0xff] }
  0xe0   :  { %v1549_v26 = vadd.f32 %v1548_v21, %v559_v15  ;;  %v433_v15 = vsub.f32 %v151_v8, %v292_v9  ;;  %v573_v21 = vmul.f32 %v432_v10, %v432_v10  ;;  %v164_v9 = vld [vmem:[#allocation2 + $0x3b8] sm:$0xff]  ;;  %v305_v10 = vld [vmem:[#allocation5 + $0x3b8] sm:$0xff] }
  0xe2   :  { %v1550_v31 = vadd.f32 %v1549_v26, %v560_v20  ;;  %v434_v20 = vsub.f32 %v152_v13, %v293_v14  ;;  %v574_v26 = vmul.f32 %v433_v15, %v433_v15  ;;  %v165_v14 = vld [vmem:[#allocation2 + $0x3c0] sm:$0xff]  ;;  %v306_v15 = vld [vmem:[#allocation5 + $0x3c0] sm:$0xff] }
  0xe4   :  { %v1551_v36 = vadd.f32 %v1550_v31, %v561_v25  ;;  %v435_v25 = vsub.f32 %v153_v18, %v294_v19  ;;  %v575_v31 = vmul.f32 %v434_v20, %v434_v20  ;;  %v166_v19 = vld [vmem:[#allocation2 + $0x3c8] sm:$0xff]  ;;  %v307_v20 = vld [vmem:[#allocation5 + $0x3c8] sm:$0xff] }
  0xe6   :  { %v1552_v41 = vadd.f32 %v1551_v36, %v562_v30  ;;  %v436_v30 = vsub.f32 %v154_v23, %v295_v24  ;;  %v576_v36 = vmul.f32 %v435_v25, %v435_v25  ;;  %v167_v24 = vld [vmem:[#allocation2 + $0x3d0] sm:$0xff]  ;;  %v308_v25 = vld [vmem:[#allocation5 + $0x3d0] sm:$0xff] }
  0xe8   :  { %v1553_v46 = vadd.f32 %v1552_v41, %v563_v35  ;;  %v437_v35 = vsub.f32 %v155_v28, %v296_v29  ;;  %v577_v41 = vmul.f32 %v436_v30, %v436_v30  ;;  %v168_v29 = vld [vmem:[#allocation2 + $0x3d8] sm:$0xff]  ;;  %v309_v30 = vld [vmem:[#allocation5 + $0x3d8] sm:$0xff] }
  0xea   :  { %v1554_v51 = vadd.f32 %v1553_v46, %v564_v40  ;;  %v438_v40 = vsub.f32 %v156_v33, %v297_v34  ;;  %v578_v46 = vmul.f32 %v437_v35, %v437_v35  ;;  %v169_v34 = vld [vmem:[#allocation2 + $0x3e0] sm:$0xff]  ;;  %v310_v35 = vld [vmem:[#allocation5 + $0x3e0] sm:$0xff] }
  0xec   :  { %v1555_v56 = vadd.f32 %v1554_v51, %v565_v45  ;;  %v439_v45 = vsub.f32 %v157_v38, %v298_v39  ;;  %v579_v51 = vmul.f32 %v438_v40, %v438_v40  ;;  %v170_v39 = vld [vmem:[#allocation2 + $0x3e8] sm:$0xff]  ;;  %v311_v40 = vld [vmem:[#allocation5 + $0x3e8] sm:$0xff] }
  0xee   :  { %v1556_v61 = vadd.f32 %v1555_v56, %v566_v50  ;;  %v440_v50 = vsub.f32 %v158_v43, %v299_v44  ;;  %v580_v56 = vmul.f32 %v439_v45, %v439_v45  ;;  %v171_v44 = vld [vmem:[#allocation2 + $0x3f0] sm:$0xff]  ;;  %v312_v45 = vld [vmem:[#allocation5 + $0x3f0] sm:$0xff] }
  0xf0   :  { %v1557_v2 = vadd.f32 %v1556_v61, %v567_v55  ;;  %v441_v55 = vsub.f32 %v159_v48, %v300_v49  ;;  %v581_v61 = vmul.f32 %v440_v50, %v440_v50  ;;  %v172_v49 = vld [vmem:[#allocation2 + $0x3f8] sm:$0xff]  ;;  %v313_v50 = vld [vmem:[#allocation5 + $0x3f8] sm:$0xff] }
  0xf2   :  { %v1558_v7 = vadd.f32 %v1557_v2, %v568_v60  ;;  %v442_v60 = vsub.f32 %v160_v53, %v301_v54  ;;  %v582_v2 = vmul.f32 %v441_v55, %v441_v55  ;;  %v173_v54 = vld [vmem:[#allocation2 + $0x400] sm:$0xff]  ;;  %v314_v55 = vld [vmem:[#allocation5 + $0x400] sm:$0xff] }
  0xf4   :  { %v1559_v12 = vadd.f32 %v1558_v7, %v569_v1  ;;  %v443_v1 = vsub.f32 %v161_v58, %v302_v59  ;;  %v583_v7 = vmul.f32 %v442_v60, %v442_v60  ;;  %v174_v59 = vld [vmem:[#allocation2 + $0x408] sm:$0xff]  ;;  %v315_v60 = vld [vmem:[#allocation5 + $0x408] sm:$0xff] }
  0xf6   :  { %v1560_v17 = vadd.f32 %v1559_v12, %v570_v6  ;;  %v444_v6 = vsub.f32 %v162_v63, %v303_v0  ;;  %v584_v12 = vmul.f32 %v443_v1, %v443_v1  ;;  %v175_v0 = vld [vmem:[#allocation2 + $0x410] sm:$0xff]  ;;  %v316_v1 = vld [vmem:[#allocation5 + $0x410] sm:$0xff] }
  0xf8   :  { %v1561_v22 = vadd.f32 %v1560_v17, %v571_v11  ;;  %v445_v11 = vsub.f32 %v163_v4, %v304_v5  ;;  %v585_v17 = vmul.f32 %v444_v6, %v444_v6  ;;  %v176_v5 = vld [vmem:[#allocation2 + $0x418] sm:$0xff]  ;;  %v317_v6 = vld [vmem:[#allocation5 + $0x418] sm:$0xff] }
  0xfa   :  { %v1562_v27 = vadd.f32 %v1561_v22, %v572_v16  ;;  %v446_v16 = vsub.f32 %v164_v9, %v305_v10  ;;  %v586_v22 = vmul.f32 %v445_v11, %v445_v11  ;;  %v177_v10 = vld [vmem:[#allocation2 + $0x420] sm:$0xff]  ;;  %v318_v11 = vld [vmem:[#allocation5 + $0x420] sm:$0xff] }
  0xfc   :  { %v1563_v32 = vadd.f32 %v1562_v27, %v573_v21  ;;  %v447_v21 = vsub.f32 %v165_v14, %v306_v15  ;;  %v587_v27 = vmul.f32 %v446_v16, %v446_v16  ;;  %v178_v15 = vld [vmem:[#allocation2 + $0x428] sm:$0xff]  ;;  %v319_v16 = vld [vmem:[#allocation5 + $0x428] sm:$0xff] }
  0xfe   :  { %v1564_v37 = vadd.f32 %v1563_v32, %v574_v26  ;;  %v448_v26 = vsub.f32 %v166_v19, %v307_v20  ;;  %v588_v32 = vmul.f32 %v447_v21, %v447_v21  ;;  %v179_v20 = vld [vmem:[#allocation2 + $0x430] sm:$0xff]  ;;  %v320_v21 = vld [vmem:[#allocation5 + $0x430] sm:$0xff] }
 0x100   :  { %v1565_v42 = vadd.f32 %v1564_v37, %v575_v31  ;;  %v449_v31 = vsub.f32 %v167_v24, %v308_v25  ;;  %v589_v37 = vmul.f32 %v448_v26, %v448_v26  ;;  %v180_v25 = vld [vmem:[#allocation2 + $0x438] sm:$0xff]  ;;  %v321_v26 = vld [vmem:[#allocation5 + $0x438] sm:$0xff] }
 0x102   :  { %v1566_v47 = vadd.f32 %v1565_v42, %v576_v36  ;;  %v450_v36 = vsub.f32 %v168_v29, %v309_v30  ;;  %v590_v42 = vmul.f32 %v449_v31, %v449_v31  ;;  %v181_v30 = vld [vmem:[#allocation2 + $0x440] sm:$0xff]  ;;  %v322_v31 = vld [vmem:[#allocation5 + $0x440] sm:$0xff] }
 0x104   :  { %v1567_v52 = vadd.f32 %v1566_v47, %v577_v41  ;;  %v451_v41 = vsub.f32 %v169_v34, %v310_v35  ;;  %v591_v47 = vmul.f32 %v450_v36, %v450_v36  ;;  %v610_v34 = vlaneseq  ;;  %v182_v36 = vld [vmem:[#allocation2 + $0x448] sm:$0xff] }
 0x106   :  { %v1568_v57 = vadd.f32 %v1567_v52, %v578_v46  ;;  %v452_v46 = vsub.f32 %v170_v39, %v311_v40  ;;  %v592_v52 = vmul.f32 %v451_v41, %v451_v41  ;;  %v183_v41 = vld [vmem:[#allocation2 + $0x450] sm:$0xff] }
 0x108   :  { %v1569_v62 = vadd.f32 %v1568_v57, %v579_v51  ;;  %v453_v51 = vsub.f32 %v171_v44, %v312_v45  ;;  %v593_v57 = vmul.f32 %v452_v46, %v452_v46  ;;  %v326_v44 = vld [vmem:[#allocation5 + $0x460] sm:$0xff] }
 0x10a   :  { %v1570_v3 = vadd.f32 %v1569_v62, %v580_v56  ;;  %v454_v56 = vsub.f32 %v172_v49, %v313_v50  ;;  %v594_v62 = vmul.f32 %v453_v51, %v453_v51  ;;  %v184_v49 = vld [vmem:[#allocation2 + $0x458] sm:$0xff]  ;;  %v325_v50 = vld [vmem:[#allocation5 + $0x458] sm:$0xff] }
 0x10c   :  { %v1571_v8 = vadd.f32 %v1570_v3, %v581_v61  ;;  %v455_v61 = vsub.f32 %v173_v54, %v314_v55  ;;  %v595_v3 = vmul.f32 %v454_v56, %v454_v56  ;;  %v466_v55 = vsub.f32 %v184_v49, %v325_v50 }
 0x10e   :  { %v1572_v13 = vadd.f32 %v1571_v8, %v582_v2  ;;  %v456_v2 = vsub.f32 %v174_v59, %v315_v60  ;;  %v596_v8 = vmul.f32 %v455_v61, %v455_v61 }
 0x110   :  { %v1573_v18 = vadd.f32 %v1572_v13, %v583_v7  ;;  %v457_v7 = vsub.f32 %v175_v0, %v316_v1  ;;  %v597_v13 = vmul.f32 %v456_v2, %v456_v2 }
 0x112   :  { %v1574_v23 = vadd.f32 %v1573_v18, %v584_v12  ;;  %v458_v12 = vsub.f32 %v176_v5, %v317_v6  ;;  %v598_v18 = vmul.f32 %v457_v7, %v457_v7 }
 0x114   :  { %v1575_v28 = vadd.f32 %v1574_v23, %v585_v17  ;;  %v459_v17 = vsub.f32 %v177_v10, %v318_v11  ;;  %v599_v23 = vmul.f32 %v458_v12, %v458_v12 }
 0x116   :  { %v1576_v33 = vadd.f32 %v1575_v28, %v586_v22  ;;  %v460_v22 = vsub.f32 %v178_v15, %v319_v16  ;;  %v600_v28 = vmul.f32 %v459_v17, %v459_v17 }
 0x118   :  { %v1577_v38 = vadd.f32 %v1576_v33, %v587_v27  ;;  %v461_v27 = vsub.f32 %v179_v20, %v320_v21  ;;  %v601_v33 = vmul.f32 %v460_v22, %v460_v22 }
 0x11a   :  { %v1578_v43 = vadd.f32 %v1577_v38, %v588_v32  ;;  %v462_v32 = vsub.f32 %v180_v25, %v321_v26  ;;  %v463_v38 = vsub.f32 %v181_v30, %v322_v31  ;;  %v602_v39 = vmul.f32 %v461_v27, %v461_v27 }
 0x11c   :  { %v1579_v48 = vadd.f32 %v1578_v43, %v589_v37  ;;  %v323_v37 = vld [vmem:[#allocation5 + $0x448] sm:$0xff]  ;;  %v185_v43 = vld [vmem:[#allocation2 + $0x460] sm:$0xff]  ;;  %v603_v46 = vmul.f32 %v462_v32, %v462_v32 }
 0x11d   :  { %v464_v45 = vsub.f32 %v182_v36, %v323_v37  ;;  %v467_v54 = vsub.f32 %v185_v43, %v326_v44 }
 0x11e   :  { %v1580_v53 = vadd.f32 %v1579_v48, %v590_v42  ;;  %v324_v42 = vld [vmem:[#allocation5 + $0x450] sm:$0xff] }
 0x11f   :  { %v465_v51 = vsub.f32 %v183_v41, %v324_v42  ;;  %v605_v56 = vmul.f32 %v464_v45, %v464_v45  ;;  %v608_v61 = vmul.f32 %v467_v54, %v467_v54 }
 0x120   :  { %v1581_v58 = vadd.f32 %v1580_v53, %v591_v47  ;;  %v611_v47 = vshrl.u32 %v610_v34, 7 }
 0x121   :  { %v606_v59 = vmul.f32 %v465_v51, %v465_v51 }
 0x122   :  { %v1582_v63 = vadd.f32 %v1581_v58, %v592_v52  ;;  %v604_v52 = vmul.f32 %v463_v38, %v463_v38 }
 0x124   :  { %v1583_v4 = vadd.f32 %v1582_v63, %v593_v57  ;;  %v751_v57 = vadd.s32 1120, %v611_v47 }
 0x126   :  { %v1584_v9 = vadd.f32 %v1583_v4, %v594_v62  ;;  %v607_v62 = vmul.f32 %v466_v55, %v466_v55  ;;  %vm1034_vm0 = vcmp.lt.s32.totalorder %v751_v57, 1125 }
 0x127   :  { %v1457_v1 = vsel %vm1034_vm0, %v608_v61, 0.0 }
 0x128   :  { %v1585_v14 = vadd.f32 %v1584_v9, %v595_v3 }
 0x12a   :  { %v1586_v19 = vadd.f32 %v1585_v14, %v596_v8 }
 0x12c   :  { %v1587_v24 = vadd.f32 %v1586_v19, %v597_v13 }
 0x12e   :  { %v1588_v29 = vadd.f32 %v1587_v24, %v598_v18 }
 0x130   :  { %v1589_v35 = vadd.f32 %v1588_v29, %v599_v23 }
 0x132   :  { %v1590_v40 = vadd.f32 %v1589_v35, %v600_v28 }
 0x134   :  { %v1591_v48 = vadd.f32 %v1590_v40, %v601_v33 }
 0x136   :  { %v1592_v53 = vadd.f32 %v1591_v48, %v602_v39 }
 0x138   :  { %v1593_v58 = vadd.f32 %v1592_v53, %v603_v46 }
 0x13a   :  { %v1594_v60 = vadd.f32 %v1593_v58, %v604_v52 }
 0x13c   :  { %v1595_v63 = vadd.f32 %v1594_v60, %v605_v56 }
 0x13e   :  { %v1596_v0 = vadd.f32 %v1595_v63, %v606_v59 }
 0x140   :  { %v1597_v2 = vadd.f32 %v1596_v0, %v607_v62 }
 0x142   :  { %v1598_v3 = vadd.f32 %v1597_v2, %v1457_v1 }
 0x144   :  { %1600 = vst [vmem:[#allocation7] sm:$0xff] %v1598_v3 }
 0x145   :  { %1678 = shalt.err (!%p1675_p6)
}
 0x146   :  { %s1679_s10 = scalar_lea.hbm %s1753_s2, 128 }
 0x147   :  { %p1680_p7 = scmp.ne.s32.totalorder %s1753_s2, %s1679_s10  ;;  %p1683_p8 = scmp.lt.u32.totalorder %s1679_s10, %s1753_s2 }
 0x149   :  { %p1685_p9 = pnand %p1683_p8, %p1680_p7 }
 0x14b   :  { %1688 = shalt.err (!%p1685_p9)
}
 0x14c   :  { %1610 = dma.vmem_to_hbm [thread:$0]  %s1608_s6, 128, %s1753_s2, [#allocation4]  }
 0x14d   :  { %1693 = dma.done.wait [#allocation4], 128  }
 0x14e   :  { %1694 = vsyncadd [#allocation4], 4294967168 }
 0x14f   :  { %1614 = vsyncpa [#allocation3], 1 }
 0x150   :  { %1615 = vsyncpa [#allocation6], 1 }
 0x151   :  { %1616 = vsyncpa [#allocation4], 1 }

</bundles_post_ra>
